<compile_context>
chip_gen: v5e
topology: v5e:2x2
jax: 0.10.0
libtpu: 0.0.40
codegen_flags: <defaults>
</compile_context>

<pallas_src>
import functools

import jax
import jax.numpy as jnp
from jax.experimental import pallas as pl
from jax.experimental.pallas import tpu as pltpu


# ---------------------------------------------------------------------------
# Excitation math shared by both kernels: fc1 -> Mish -> fc2 -> sigmoid (f32).
# ---------------------------------------------------------------------------
def _excite(pooled, w1_ref, w2_ref, *, fc1_on_mxu):
    # pooled: (N, C) f32.  Returns sigmoid gate, (N, C) f32.
    if fc1_on_mxu:
        # Large N*C: use the (otherwise idle) MXU; w1_ref holds (C, Cr).
        h = jnp.dot(pooled, w1_ref[...].astype(jnp.float32),
                    preferred_element_type=jnp.float32)             # (N, Cr)
    else:
        # Small tiles: broadcast-multiply + lane reduce on VPU/XLU; w1_ref is (Cr, C).
        w1t = w1_ref[...].astype(jnp.float32)
        h = jnp.sum(pooled[:, None, :] * w1t[None, :, :], axis=-1)  # (N, Cr)
    # Mish: x * tanh(softplus(x))
    h = h * jnp.tanh(jax.nn.softplus(h))
    w2 = w2_ref[...].astype(jnp.float32)                            # (Cr, C)
    if fc1_on_mxu:
        y = jnp.dot(h, w2, preferred_element_type=jnp.float32)      # (N, C)
    else:
        y = jnp.sum(h[:, :, None] * w2[None, :, :], axis=1)         # (N, C)
    return jax.nn.sigmoid(y)


# ---------------------------------------------------------------------------
# Single-pass kernel: whole (Bt, C, HW) slab resident per grid step.
# ---------------------------------------------------------------------------
def _se_kernel(x_ref, w1_ref, w2_ref, o_ref, *, inv_hw, fc1_on_mxu):
    x = x_ref[...]                                                  # native dtype
    # Squeeze: f32-accumulated lane reduce. Block dim == full HW, so Mosaic masks
    # the physical lane padding and the sum covers only the logical H*W elements.
    pooled = jnp.sum(x, axis=-1, dtype=jnp.float32) * inv_hw        # (Bt, C)
    y = _excite(pooled, w1_ref, w2_ref, fc1_on_mxu=fc1_on_mxu)      # (Bt, C) f32
    # Scale in the input dtype: single elementwise pass, no f32 copy of x.
    o_ref[...] = x * y.astype(x.dtype)[:, :, None]


# ---------------------------------------------------------------------------
# Two-pass fallback for feature maps whose (C, HW) slab exceeds the VMEM budget.
# Pass 1: HW-chunked pool with a resident (1, 1, C) accumulator; excitation in
#         the finalize step.  Pass 2: HW-chunked gate multiply.
# ---------------------------------------------------------------------------
def _se_pool_kernel(x_ref, w1_ref, w2_ref, g_ref, *, inv_hw, hw, hw_t, fc1_on_mxu):
    j = pl.program_id(1)

    @pl.when(j == 0)
    def _():
        g_ref[...] = jnp.zeros_like(g_ref)

    x = x_ref[...].astype(jnp.float32)                              # (1, C, hw_t)
    # The last spatial block may overrun H*W: mask those lanes out of the sum.
    lane = jax.lax.broadcasted_iota(jnp.int32, x.shape, 2)
    x = jnp.where(j * hw_t + lane < hw, x, 0.0)
    g_ref[...] += jnp.sum(x, axis=-1)[:, None, :]                   # (1, 1, C)

    @pl.when(j == pl.num_programs(1) - 1)
    def _():
        pooled = g_ref[...][:, 0, :] * inv_hw                       # (1, C)
        g_ref[...] = _excite(pooled, w1_ref, w2_ref,
                             fc1_on_mxu=fc1_on_mxu)[:, None, :]


def _se_scale_kernel(x_ref, g_ref, o_ref):
    x = x_ref[...]                                                  # (1, C, hw_t)
    gate = g_ref[...][:, 0, :].astype(x.dtype)[:, :, None]          # (1, C, 1)
    o_ref[...] = x * gate


# ---------------------------------------------------------------------------
# Host-side helpers.
# ---------------------------------------------------------------------------
def _tpu_vmem_and_cores():
    """Per-TensorCore VMEM capacity and TensorCore count (best effort)."""
    vmem = None
    try:
        vmem = int(pltpu.get_tpu_info().vmem_capacity_bytes)
    except Exception:
        vmem = None
    kind = ""
    try:
        kind = jax.devices()[0].device_kind.lower()
    except Exception:
        pass
    if vmem is None:
        vmem = (64 << 20) if "7" in kind else (128 << 20)
    # v7x-like parts have 64 MiB VMEM per TC and 2 TCs per chip.
    cores = 2 if vmem <= (64 << 20) else 1
    return vmem, cores


def _pick_block_batch(b, c, hw_pad, itemsize, budget, min_steps):
    """Largest batch tile whose x block fits `budget`, keeping >= min_steps grid
    steps whenever B allows (>= 2 steps per TensorCore for pipelining)."""
    # TODO(synk): allow non-divisor Bt via pl.cdiv + a pl.when-guarded tail so
    # prime/odd batch sizes don't fall back to tiny blocks.
    best = 1
    for cand in range(1, b + 1):
        if b % cand:
            continue
        if cand * c * hw_pad * itemsize > budget:
            continue
        if b // cand < min(min_steps, b):
            continue
        best = cand
    return best


def _se_two_pass(x3, w1, w2, b, c, cr, hw, hw_pad, itemsize,
                 budget, vmem_limit_cap, w_bytes, fc1_on_mxu):
    # TODO(synk): fuse the two passes with an inner emit_pipeline over HW chunks
    # to avoid the second HBM read of x when (C, HW) only slightly exceeds VMEM.
    if fc1_on_mxu is None:
        fc1_on_mxu = False            # per-sample (1, C) excitation: VPU/XLU path
    hw_t = max(128, min(hw_pad, (budget // (c * itemsize)) // 128 * 128))
    grid_hw = pl.cdiv(hw, hw_t)

    block_bytes = c * hw_t * itemsize
    vmem_limit = int(min(max(4 * block_bytes + 2 * w_bytes + (2 << 20), 16 << 20),
                         vmem_limit_cap))

    w1_arg = w1 if fc1_on_mxu else jnp.transpose(w1)
    w1_block = (c, cr) if fc1_on_mxu else (cr, c)

    pool_kernel = functools.partial(
        _se_pool_kernel, inv_hw=1.0 / hw, hw=hw, hw_t=hw_t, fc1_on_mxu=fc1_on_mxu)

    gates = pl.pallas_call(
        pool_kernel,
        out_shape=jax.ShapeDtypeStruct((b, 1, c), jnp.float32),
        grid_spec=pltpu.PrefetchScalarGridSpec(
            num_scalar_prefetch=0,
            grid=(b, grid_hw),
            in_specs=[
                pl.BlockSpec((1, c, hw_t), lambda i, j: (i, 0, j)),
                pl.BlockSpec(w1_block, lambda i, j: (0, 0)),
                pl.BlockSpec((cr, c), lambda i, j: (0, 0)),
            ],
            out_specs=pl.BlockSpec((1, 1, c), lambda i, j: (i, 0, 0)),
        ),
        compiler_params=pltpu.CompilerParams(
            dimension_semantics=("parallel", "arbitrary"),
            vmem_limit_bytes=vmem_limit,
        ),
        cost_estimate=pl.CostEstimate(
            flops=int(2 * b * c * hw + 4 * b * c * cr),
            transcendentals=int(b * (3 * cr + c)),
            bytes_accessed=int(b * c * hw * itemsize + 2 * w_bytes),
        ),
    )(x3, w1_arg, w2)

    out = pl.pallas_call(
        _se_scale_kernel,
        out_shape=jax.ShapeDtypeStruct((b, c, hw), x3.dtype),
        grid_spec=pltpu.PrefetchScalarGridSpec(
            num_scalar_prefetch=0,
            grid=(b, grid_hw),
            in_specs=[
                pl.BlockSpec((1, c, hw_t), lambda i, j: (i, 0, j)),
                pl.BlockSpec((1, 1, c), lambda i, j: (i, 0, 0)),
            ],
            out_specs=pl.BlockSpec((1, c, hw_t), lambda i, j: (i, 0, j)),
        ),
        compiler_params=pltpu.CompilerParams(
            dimension_semantics=("parallel", "parallel"),
            vmem_limit_bytes=vmem_limit,
        ),
        cost_estimate=pl.CostEstimate(
            flops=int(b * c * hw),
            transcendentals=0,
            bytes_accessed=int(2 * b * c * hw * itemsize + 4 * b * c),
        ),
    )(x3, gates)
    return out


def se_module(x, w1, w2, *, block_batch=None, vmem_block_budget=None,
              fc1_on_mxu=None):
    """x: (B, C, H, W) NCHW.  w1: (C, C//r).  w2: (C//r, C).  Returns (B, C, H, W)."""
    b, c, h, w = x.shape
    hw = h * w
    cr = w1.shape[1]
    assert w1.shape == (c, cr) and w2.shape == (cr, c)

    itemsize = jnp.dtype(x.dtype).itemsize
    hw_pad = ((hw + 127) // 128) * 128      # physical lane footprint (VMEM sizing only)
    vmem_cap, cores = _tpu_vmem_and_cores()
    vmem_limit_cap = int(vmem_cap * 3 // 4)  # ~96 MiB on v5e/v6e, ~48 MiB on v7x

    if vmem_block_budget is None:
        # ~16 MiB blocks on v5e/v6e (128 MiB VMEM), ~8 MiB on v7x (64 MiB/TC).
        vmem_block_budget = vmem_cap // 8

    # No padding, no post-slice: flattening spatial dims is a free reshape.
    x3 = x.reshape(b, c, hw)
    w_bytes = (w1.size + w2.size) * jnp.dtype(w1.dtype).itemsize

    # If a single sample's (C, HW) slab doesn't fit the block budget, tile HW
    # with the two-pass pool/gate kernels instead of blowing VMEM.
    if c * hw_pad * itemsize > vmem_block_budget:
        out = _se_two_pass(x3, w1, w2, b, c, cr, hw, hw_pad, itemsize,
                           vmem_block_budget, vmem_limit_cap, w_bytes, fc1_on_mxu)
        return out.reshape(b, c, h, w)

    min_steps = 2 * cores                    # >= 2 grid steps per TensorCore
    bt = block_batch if block_batch is not None else _pick_block_batch(
        b, c, hw_pad, itemsize, vmem_block_budget, min_steps)
    grid_b = b // bt
    if fc1_on_mxu is None:
        fc1_on_mxu = bt * c >= 128 * 128     # big tiles: MXU, not (Bt,Cr,C) temps

    block_bytes = bt * c * hw_pad * itemsize
    vmem_needed = 4 * block_bytes + 2 * w_bytes + (2 << 20)
    vmem_limit = int(min(max(vmem_needed, 16 << 20), vmem_limit_cap))

    # Mem-bound cost hint for XLA scheduling (real hw, not padded).
    flops = int(2 * b * c * hw + 4 * b * c * cr + 2 * b * c)
    transcendentals = int(b * (3 * cr + c))
    bytes_accessed = int(2 * b * c * hw * itemsize + 2 * w_bytes)

    kernel = functools.partial(_se_kernel, inv_hw=1.0 / hw, fc1_on_mxu=fc1_on_mxu)
    # fc1 weight layout: (C, Cr) for the MXU path, pre-transposed (Cr, C) so the
    # contraction axis sits on lanes for the VPU/XLU path.
    w1_arg = w1 if fc1_on_mxu else jnp.transpose(w1)
    w1_block = (c, cr) if fc1_on_mxu else (cr, c)

    out = pl.pallas_call(
        kernel,
        out_shape=jax.ShapeDtypeStruct((b, c, hw), x.dtype),
        grid_spec=pltpu.PrefetchScalarGridSpec(
            num_scalar_prefetch=0,
            grid=(grid_b,),
            in_specs=[
                pl.BlockSpec((bt, c, hw), lambda i: (i, 0, 0)),
                pl.BlockSpec(w1_block, lambda i: (0, 0)),
                pl.BlockSpec((cr, c), lambda i: (0, 0)),
            ],
            out_specs=pl.BlockSpec((bt, c, hw), lambda i: (i, 0, 0)),
        ),
        compiler_params=pltpu.CompilerParams(
            dimension_semantics=("parallel",),
            vmem_limit_bytes=vmem_limit,
        ),
        cost_estimate=pl.CostEstimate(
            flops=flops,
            transcendentals=transcendentals,
            bytes_accessed=bytes_accessed,
        ),
    )(x3, w1_arg, w2)

    return out.reshape(b, c, h, w)


def _reference(x, w1, w2):
    # Pure-JAX reference of the PyTorch forward.
    y = jnp.mean(x.astype(jnp.float32), axis=(2, 3))             # (B, C)
    y = y @ w1.astype(jnp.float32)                               # fc1, no bias
    y = y * jnp.tanh(jax.nn.softplus(y))                         # Mish
    y = y @ w2.astype(jnp.float32)                               # fc2, no bias
    y = jax.nn.sigmoid(y)
    return (x.astype(jnp.float32) * y[:, :, None, None]).astype(x.dtype)


if __name__ == "__main__":
    root = jax.random.PRNGKey(0)

    def make_inputs(b, c, h, w, reduction=16, salt=0):
        cr = c // reduction
        kx, k1, k2 = jax.random.split(jax.random.fold_in(root, salt), 3)
        x = jax.random.normal(kx, (b, c, h, w), dtype=jnp.float32)
        # PyTorch nn.Linear(in, out).weight is (out, in); wrapper takes (in, out).
        bound1 = 1.0 / (c ** 0.5)
        bound2 = 1.0 / (cr ** 0.5)
        w1 = jax.random.uniform(k1, (c, cr), minval=-bound1, maxval=bound1,
                                dtype=jnp.float32)
        w2 = jax.random.uniform(k2, (cr, c), minval=-bound2, maxval=bound2,
                                dtype=jnp.float32)
        return x, w1, w2

    def check(out, x, w1, w2):
        ref = _reference(x, w1, w2)
        assert out.shape == x.shape
        assert jnp.allclose(out, ref, atol=1e-5, rtol=1e-5), "mismatch vs reference"

    # 1) Main single-pass path, H*W a multiple of 128.
    x, w1, w2 = make_inputs(2, 64, 16, 16, salt=1)
    out = jax.block_until_ready(se_module(x, w1, w2))
    check(out, x, w1, w2)

    # 2) Main path with H*W NOT a multiple of 128 (no host pad / slice passes).
    x, w1, w2 = make_inputs(2, 64, 12, 12, salt=2)
    out = jax.block_until_ready(se_module(x, w1, w2))
    check(out, x, w1, w2)

    # 3) MXU fc1/fc2 branch (forced here; auto-selected when Bt*C is large).
    x, w1, w2 = make_inputs(2, 64, 16, 16, salt=3)
    out = jax.block_until_ready(se_module(x, w1, w2, fc1_on_mxu=True))
    check(out, x, w1, w2)

    # 4) HW-tiled two-pass fallback (forced via a tiny block budget; exercises
    #    the masked spatial tail since 144 lanes span two 128-lane chunks).
    x, w1, w2 = make_inputs(2, 64, 12, 12, salt=4)
    out = jax.block_until_ready(se_module(x, w1, w2, vmem_block_budget=32 * 1024))
    check(out, x, w1, w2)

    print("KERNEL_OK")
</pallas_src>

<mosaic_0001>
module attributes {stable_mosaic.version = 11 : i64} {
  func.func @_se_kernel(%arg0: i32, %arg1: memref<1x64x256xf32, #tpu.memory_space<vmem>>, %arg2: memref<4x64xf32, #tpu.memory_space<vmem>>, %arg3: memref<4x64xf32, #tpu.memory_space<vmem>>, %arg4: memref<1x64x256xf32, #tpu.memory_space<vmem>>) attributes {dimension_semantics = [#tpu.dimension_semantics<parallel>], iteration_bounds = array<i64: 2>, scalar_prefetch = 0 : i64, scratch_operands = 0 : i64, tpu.core_type = #tpu.core_type<tc>, window_params = [{transform_indices = @transform_0, window_bounds = array<i64: 1, 64, 256>}, {pipeline_mode = #tpu.pipeline_mode<synchronous>, transform_indices = @transform_1, window_bounds = array<i64: 4, 64>}, {pipeline_mode = #tpu.pipeline_mode<synchronous>, transform_indices = @transform_2, window_bounds = array<i64: 4, 64>}, {transform_indices = @transform_3, window_bounds = array<i64: 1, 64, 256>}]} {
    %c0 = arith.constant 0 : index
    %c0_0 = arith.constant 0 : index
    %c0_1 = arith.constant 0 : index
    %0 = vector.load %arg1[%c0, %c0_0, %c0_1] : memref<1x64x256xf32, #tpu.memory_space<vmem>>, vector<1x64x256xf32>
    %cst = arith.constant dense<0.000000e+00> : vector<1x64xf32>
    %1 = vector.multi_reduction <add>, %0, %cst [2] : vector<1x64x256xf32> to vector<1x64xf32>
    %cst_2 = arith.constant 3.906250e-03 : f32
    %2 = vector.broadcast %cst_2 : f32 to vector<1x64xf32>
    %3 = arith.mulf %1, %2 : vector<1x64xf32>
    %c0_3 = arith.constant 0 : index
    %c0_4 = arith.constant 0 : index
    %4 = vector.load %arg2[%c0_3, %c0_4] : memref<4x64xf32, #tpu.memory_space<vmem>>, vector<4x64xf32>
    %5 = vector.shape_cast %3 : vector<1x64xf32> to vector<1x1x64xf32>
    %6 = vector.shape_cast %4 : vector<4x64xf32> to vector<1x4x64xf32>
    %7 = vector.broadcast %5 : vector<1x1x64xf32> to vector<1x4x64xf32>
    %8 = arith.mulf %7, %6 : vector<1x4x64xf32>
    %cst_5 = arith.constant dense<0.000000e+00> : vector<1x4xf32>
    %9 = vector.multi_reduction <add>, %8, %cst_5 [2] : vector<1x4x64xf32> to vector<1x4xf32>
    %cst_6 = arith.constant 0.000000e+00 : f32
    %10 = vector.broadcast %cst_6 : f32 to vector<1x4xf32>
    %11 = arith.maximumf %9, %10 : vector<1x4xf32>
    %12 = vector.broadcast %cst_6 : f32 to vector<1x4xf32>
    %13 = arith.subf %9, %12 : vector<1x4xf32>
    %14 = arith.cmpf one, %13, %13 : vector<1x4xf32>
    %15 = vector.broadcast %cst_6 : f32 to vector<1x4xf32>
    %16 = arith.addf %9, %15 : vector<1x4xf32>
    %17 = math.absf %13 : vector<1x4xf32>
    %cst_7 = arith.constant 0.000000e+00 : f32
    %18 = vector.broadcast %cst_7 : f32 to vector<1x4xf32>
    %19 = arith.subf %18, %17 : vector<1x4xf32>
    %20 = math.exp %19 : vector<1x4xf32>
    %21 = math.log1p %20 : vector<1x4xf32>
    %22 = arith.addf %11, %21 : vector<1x4xf32>
    %23 = arith.select %14, %16, %22 : vector<1x4xi1>, vector<1x4xf32>
    %24 = math.tanh %23 : vector<1x4xf32>
    %25 = arith.mulf %9, %24 : vector<1x4xf32>
    %c0_8 = arith.constant 0 : index
    %c0_9 = arith.constant 0 : index
    %26 = vector.load %arg3[%c0_8, %c0_9] : memref<4x64xf32, #tpu.memory_space<vmem>>, vector<4x64xf32>
    %27 = vector.shape_cast %25 : vector<1x4xf32> to vector<1x4x1xf32>
    %28 = vector.shape_cast %26 : vector<4x64xf32> to vector<1x4x64xf32>
    %29 = vector.broadcast %27 : vector<1x4x1xf32> to vector<1x4x64xf32>
    %30 = arith.mulf %29, %28 : vector<1x4x64xf32>
    %cst_10 = arith.constant dense<0.000000e+00> : vector<1x64xf32>
    %31 = vector.multi_reduction <add>, %30, %cst_10 [1] : vector<1x4x64xf32> to vector<1x64xf32>
    %32 = arith.negf %31 : vector<1x64xf32>
    %33 = math.exp %32 : vector<1x64xf32>
    %cst_11 = arith.constant 1.000000e+00 : f32
    %34 = vector.broadcast %cst_11 : f32 to vector<1x64xf32>
    %35 = arith.addf %34, %33 : vector<1x64xf32>
    %36 = arith.divf %34, %35 : vector<1x64xf32>
    %37 = vector.shape_cast %36 : vector<1x64xf32> to vector<1x64x1xf32>
    %38 = vector.broadcast %37 : vector<1x64x1xf32> to vector<1x64x256xf32>
    %39 = arith.mulf %0, %38 : vector<1x64x256xf32>
    %c0_12 = arith.constant 0 : index
    %c0_13 = arith.constant 0 : index
    %c0_14 = arith.constant 0 : index
    %40 = vector.load %arg4[%c0_12, %c0_13, %c0_14] : memref<1x64x256xf32, #tpu.memory_space<vmem>>, vector<1x64x256xf32>
    tpu.vector_store %arg4[%c0_12, %c0_13, %c0_14], %39 {strides = array<i32>} : memref<1x64x256xf32, #tpu.memory_space<vmem>>, vector<1x64x256xf32>,
    return
  }
  func.func @transform_0(%arg0: i32) -> (i32, i32, i32) {
    %c0_i32 = arith.constant 0 : i32
    %c0_i32_0 = arith.constant 0 : i32
    %c0_i32_1 = arith.constant 0 : i32
    return %arg0, %c0_i32, %c0_i32_0 : i32, i32, i32
  }
  func.func @transform_1(%arg0: i32) -> (i32, i32) {
    %c0_i32 = arith.constant 0 : i32
    %c0_i32_0 = arith.constant 0 : i32
    %c0_i32_1 = arith.constant 0 : i32
    return %c0_i32, %c0_i32_0 : i32, i32
  }
  func.func @transform_2(%arg0: i32) -> (i32, i32) {
    %c0_i32 = arith.constant 0 : i32
    %c0_i32_0 = arith.constant 0 : i32
    %c0_i32_1 = arith.constant 0 : i32
    return %c0_i32, %c0_i32_0 : i32, i32
  }
  func.func @transform_3(%arg0: i32) -> (i32, i32, i32) {
    %c0_i32 = arith.constant 0 : i32
    %c0_i32_0 = arith.constant 0 : i32
    %c0_i32_1 = arith.constant 0 : i32
    return %arg0, %c0_i32, %c0_i32_0 : i32, i32, i32
  }
}

</mosaic_0001>

<bundles_post_ra>
// kernel: tpu_custom_call.1
= control target key start
LH: loop header
LB: loop body
LE: loop exit
PB: predicated region body
PF: predicated region fallthrough
CT: control target
= control target key end

     0   :  { %8 = vsyncpa [#allocation3], 0  ;;  %s1749_s0 = inlined_call_operand.hbm [shape: f32[2,64,256], index: 0, kind: input, shape index: {}]   ;;  %s1750_s1 = inlined_call_operand.hbm [shape: f32[4,64], index: 1, kind: input, shape index: {}]   ;;  %s1751_s2 = inlined_call_operand.hbm [shape: f32[4,64], index: 2, kind: input, shape index: {}]   ;;  %s1752_s3 = inlined_call_operand.hbm [shape: f32[2,64,256], index: 3, kind: output, shape index: {}]  }
   0x1   :  { %10 = vsyncpa [#allocation3 + $0x1], 0 }
   0x2   :  { %11 = vsyncpa [#allocation6], 0 }
   0x3   :  { %12 = vsyncpa [#allocation4], 0 }
   0x4   :  { %14 = vsyncpa [#allocation4 + $0x1], 0  ;;  %s1317_s12 = smov 0   ;;  %s1319_s13 = smov 0  }
   0x5   :  { %s1321_s14 = smov 0   ;;  %s1323_s15 = smov 0  }
   0x6 LB: > { %s1338_s16 = sadd.s32 4294967295, %s1288_s15   ;;  %s981_s17 = sadd.s32 4294967294, %s1288_s15   ;;  %s1288_s15 = sphi %s1323_s15, %s1769_s15   ;;  %s1284_s14 = sphi %s1321_s14, %s1768_s14   ;;  %s1280_s13 = sphi %s1319_s13, %s1767_s13   ;;  %s1276_s12 = sphi %s1317_s12, %s1766_s12  }
   0x7   : > { %s1342_s18 = sadd.s32 1, %s1288_s15   ;;  %s27_s19 = sadd.s32 1, %s1284_s14 }
   0x8   : > { %s24_s20 = ssub.s32 %s1288_s15, %s1342_s18  ;;  %p34_p0 = scmp.ne.s32.totalorder %s1284_s14, %s1280_s13 }
   0x9   : > { %p25_p1 = scmp.eq.s32.totalorder %s24_s20, 0  ;;  %p35_p2 = scmp.eq.s32.totalorder %s1288_s15, 0 }
   0xa   : > { %p40_p3 = scmp.ne.s32.totalorder %s1280_s13, %s1276_s12  ;;  %p41_p4 = scmp.eq.s32.totalorder %s1338_s16, 0 }
   0xb   : > { %s1354_s21 = scalar_select %p25_p1, %s1284_s14, %s27_s19  }
   0xc   : > { %p1356_p5 = por %p35_p2, %p34_p0  ;;  %p1362_p6 = por %p41_p4, %p40_p3 }
   0xd   : > { %p106_p7 = scmp.eq.s32.totalorder %s1338_s16, 1  ;;  %p112_p8 = scmp.eq.s32.totalorder %s981_s17, 1 }
   0xe   : > { %p982_p9 = scmp.ge.s32.totalorder %s1288_s15, 1  ;;  %p119_p10 = scmp.lt.s32.totalorder %s1288_s15, 3 }
   0xf   : > { %p1369_p11 = por %p106_p7, %p34_p0  ;;  %p1373_p12 = por %p112_p8, %p40_p3 }
  0x10   : > { %p1377_p13 = pnand %p982_p9, %p119_p10  ;;  %s131_s29 = sshll.u32 %s1750_s1, 4  ;;  %s132_s29 = int_to_ptr.hbm [resolvable:$true] %s131_s29 }
  0x11   : > { %s1290_s30 = smov [#allocation5]   ;;  %p1031_p3 = scmp.lt.s32.totalorder %s1288_s15, 2 }
  0x12   : > { %p1014_p1 = pneg %p1377_p13  ;;  %s133_s4 = sshll.u32 %s1290_s30, 4  ;;  %s134_s4 = int_to_ptr.vmem [resolvable:$true] %s133_s4 }
  0x13   : > { %s143_s7 = sshll.u32 %s1751_s2, 4  ;;  %p1395_p7 = pnand %p1031_p3, %p1356_p5  ;;  %s144_s7 = int_to_ptr.hbm [resolvable:$true] %s143_s7 }
  0x14   : > { %p1015_p2 = pnand %p1014_p1, %p41_p4  ;;  %s1291_s9 = smov [#allocation7]  }
  0x15   : > { %s145_s10 = sshll.u32 %s1291_s9, 4  ;;  %s156_s11 = sand.u32 1, %s1284_s14   ;;  %s146_s10 = int_to_ptr.vmem [resolvable:$true] %s145_s10 }
  0x16   : > { %1017 = dma.hbm_to_vmem [thread:$0]  (!%p1015_p2), %s132_s29, 64, %s134_s4, [#allocation6]  }
  0x17   : > { %1020 = dma.hbm_to_vmem [thread:$0]  (!%p1015_p2), %s144_s7, 64, %s146_s10, [#allocation6]  }
  0x18   : > { %s986_s17 = sshll.u32 %s156_s11, 7  ;;  %s1000_s19 = sshll.u32 %s1288_s15, 7 }
  0x19   : > { %s165_s28 = scalar_lea.hbm %s1749_s0, %s1000_s19  ;;  %s160_s30 = scalar_lea.vmem [#allocation2], %s986_s17 }
  0x1a   : > { %s168_s5 = sshll.u32 %s160_s30, 4  ;;  %s166_s29 = sshll.u32 %s165_s28, 4  ;;  %s169_s5 = int_to_ptr.vmem [resolvable:$true] %s168_s5  ;;  %s167_s29 = int_to_ptr.hbm [resolvable:$true] %s166_s29 }
  0x1b   : > { %s157_s22 = scalar_lea.sflag [#allocation3], %s156_s11  ;;  %s1188_s4 = sshra.s32 %s167_s29, 4  ;;  %s1189_s4 = int_to_ptr.hbm [resolvable:$true] %s1188_s4 }
  0x1c   : > { %s1190_s6 = scalar_lea.hbm %s1189_s4, 128  ;;  %p1192_p8 = pneg %p1395_p7 }
  0x1d   : > { %p1191_p5 = scmp.ne.s32.totalorder %s1189_s4, %s1190_s6  ;;  %s1195_s10 = scalar_lea.hbm %s1749_s0, 256 }
  0x1e   : > { %p1196_p1 = scmp.lt.s32.totalorder %s1189_s4, %s1749_s0  ;;  %p1197_p2 = scmp.lt.s32.totalorder %s1195_s10, %s1190_s6 }
  0x1f   : > { %p1193_p9 = pnand %p1192_p8, %p1191_p5 }
  0x20   : > { %p1198_p3 = por %p1197_p2, %p1196_p1 }
  0x21   : > { %p1194_p10 = pneg %p1193_p9 }
  0x23   : > { %p1199_p0 = pnand %p1198_p3, %p1194_p10 }
  0x25   : > { %1202 = shalt.err (!%p1199_p0)
}
  0x26   : > { %s1292_s11 = smov 256   ;;  %s1293_s17 = smov 16  }
  0x27   : > { %1024 = dma.hbm_to_vmem [thread:$0]  (!%p1395_p7), %s167_s29, 2048, %s169_s5, %s157_s22, %s1292_s11, %s1292_s11, %s1293_s17  }
  0x28   : > { %180 = sbr.rel (%p1377_p13) target bundleno = 868 (0x364), region = 32 }
  0x2d   : > { %s1417_s27 = sand.u32 1, %s1280_s13  }
  0x2e   : > { %s990_s28 = sshll.u32 %s1417_s27, 7  ;;  %s183_s30 = scalar_lea.sflag [#allocation3], %s1417_s27 }
  0x2f   : > { %s1423_s4 = scalar_lea.vmem [#allocation2], %s990_s28 }
  0x30   : > { %1263 = dma.done.wait (%p1362_p6), %s183_s30, 2048  }
  0x31   : > { %1265 = vsyncadd (%p1362_p6), %s183_s30, 4294965248 }
  0x32   : > { %1267 = dma.done.wait (%p41_p4), [#allocation6], 128  }
  0x33   : > { %1269 = vsyncadd (%p41_p4), [#allocation6], 4294967168  ;;  %v271_v0 = vlaneseq  ;;  %v1442_v3 = vld [vmem:[%s1423_s4 + $0x40] sm:$0xff]  ;;  %v1445_v4 = vld [vmem:[%s1423_s4 + $0x48] sm:$0xff]  ;;  %v1294_v46 = vmov 0   ;;  %vm663_vm0 = vcmask 130112  }
  0x34   : > { %v1448_v5 = vld [vmem:[%s1423_s4 + $0x20] sm:$0xff]  ;;  %v248_v6 = vadd.f32 %v1445_v4, %v1442_v3  ;;  %v1453_v7 = vld [vmem:[%s1423_s4 + $0x28] sm:$0xff]  ;;  %v1469_v13 = vld [vmem:[%s1423_s4 + $0x50] sm:$0xff]  ;;  %vm667_vm1 = vcmask 195712   ;;  %vm671_vm2 = vcmask 261312   ;;  %vm675_vm3 = vcmask 326912  }
  0x35   : > { %v1434_v1 = vshrl.u32 %v271_v0, 7  ;;  %v1456_v8 = vld [vmem:[%s1423_s4] sm:$0xff]  ;;  %v1459_v9 = vld [vmem:[%s1423_s4 + $0x8] sm:$0xff]  ;;  %v242_v10 = vadd.f32 %v1453_v7, %v1448_v5  ;;  %v1472_v14 = vld [vmem:[%s1423_s4 + $0x58] sm:$0xff]  ;;  %vm679_vm4 = vcmask 392512   ;;  %vm683_vm5 = vcmask 458112  }
  0x36   : > { %v236_v11 = vadd.f32 %v1459_v9, %v1456_v8  ;;  %249 = vadd.xlane.f32.xlu2 %v248_v6  ;;  %v1475_v15 = vld [vmem:[%s1423_s4 + $0x30] sm:$0xff]  ;;  %v1478_v16 = vld [vmem:[%s1423_s4 + $0x38] sm:$0xff]  ;;  %v251_v19 = vadd.f32 %v1472_v14, %v1469_v13  ;;  %v1500_v24 = vld [vmem:[%s1423_s4 + $0x60] sm:$0xff]  ;;  %vm687_vm6 = vcmask 523712   ;;  %vm734_vm7 = vcmask 1041409   ;;  %s1683_s23 = scalar_lea.vmem [#allocation8], %s990_s28 }
  0x37   : > { %1074 = vset.pattern.permute.xlu2 %v1434_v1  ;;  %v1438_v2 = vadd.s32 8, %v1434_v1  ;;  %v1466_v12 = vadd.s32 16, %v1434_v1  ;;  %243 = vadd.xlane.f32.xlu1 %v242_v10  ;;  %v1481_v17 = vld [vmem:[%s1423_s4 + $0x10] sm:$0xff]  ;;  %v1484_v18 = vld [vmem:[%s1423_s4 + $0x18] sm:$0xff]  ;;  %v245_v20 = vadd.f32 %v1478_v16, %v1475_v15  ;;  %v1503_v25 = vld [vmem:[%s1423_s4 + $0x68] sm:$0xff]  ;;  %v1510_v30 = vadd.s32 24, %v1434_v1 }
  0x38   : > { %237 = vadd.xlane.f32.xlu0 %v236_v11  ;;  %v239_v21 = vadd.f32 %v1484_v18, %v1481_v17  ;;  %v1494_v22 = vld [vmem:[%s1423_s4 + $0x70] sm:$0xff]  ;;  %v1497_v23 = vld [vmem:[%s1423_s4 + $0x78] sm:$0xff]  ;;  %v254_v27 = vadd.f32 %v1503_v25, %v1500_v24  ;;  %v268_v28 = vld [vmem:[#allocation5] sm:$0xf]  ;;  %v1515_v31 = vadd.s32 40, %v1434_v1  ;;  %v1519_v33 = vadd.s32 32, %v1434_v1 }
  0x39   : > { %1075 = vset.pattern.permute.xlu0 %v1438_v2  ;;  %1076 = vset.pattern.permute.xlu1 %v1466_v12  ;;  %1761 = vst [vmem:[#allocation12_spill] sm:$0xff] %v1494_v22  ;;  %v257_v26 = vadd.f32 %v1497_v23, %v1494_v22  ;;  %v270_v29 = vperm.slane %v268_v28, 0  ;;  %v319_v32 = vperm.slane %v268_v28, 1  ;;  %v1524_v34 = vadd.s32 56, %v1434_v1  ;;  %s1001_s26 = sshll.u32 %s1338_s16, 7  ;;  %s886_s22 = sshll.u32 %s1683_s23, 4  ;;  %s887_s22 = int_to_ptr.vmem [resolvable:$true] %s886_s22 }
  0x3a   : > { %1762 = vst [vmem:[#allocation13_spill] sm:$0xff] %v1497_v23  ;;  %v1528_v35 = vadd.s32 48, %v1434_v1  ;;  %v368_v36 = vperm.slane %v268_v28, 2  ;;  %v1538_v37 = vperm.slane %v268_v28, 3  ;;  %vm736_vm8 = vcmask 1042434   ;;  %s885_s29 = scalar_lea.hbm %s1752_s3, %s1001_s26  ;;  %s874_s16 = scalar_lea.sflag [#allocation4], %s1417_s27 }
  0x3b   : > { %vm738_vm9 = vcmask 1043459   ;;  %vm741_vm10 = vcmask 519168   ;;  %s888_s6 = sshll.u32 %s885_s29, 4  ;;  %s1238_s19 = scalar_lea.hbm %s1752_s3, 256  ;;  %s889_s6 = int_to_ptr.hbm [resolvable:$true] %s888_s6 }
  0x3c   : > { %s1232_s7 = sshra.s32 %s889_s6, 4  ;;  %s1233_s7 = int_to_ptr.hbm [resolvable:$true] %s1232_s7 }
  0x3d   : > { %s1234_s9 = scalar_lea.hbm %s1233_s7, 128  ;;  %p1239_p0 = scmp.lt.s32.totalorder %s1233_s7, %s1752_s3 }
  0x3e   : > { %252 = vadd.xlane.f32.xlu2 %v251_v19  ;;  %p1235_p4 = scmp.ne.s32.totalorder %s1233_s7, %s1234_s9  ;;  %p1240_p7 = scmp.lt.s32.totalorder %s1238_s19, %s1234_s9 }
  0x3f   : > { %246 = vadd.xlane.f32.xlu1 %v245_v20 }
  0x40   : > { %240 = vadd.xlane.f32.xlu0 %v239_v21  ;;  %p1236_p6 = pnand %p1235_p4, %p1369_p11  ;;  %p1241_p5 = por %p1240_p7, %p1239_p0 }
  0x42   : > { %p1237_p13 = pneg %p1236_p6 }
  0x44   : > { %p1242_p8 = pnand %p1241_p5, %p1237_p13 }
  0x47   : > { %258 = vadd.xlane.f32.xlu1 %v257_v26 }
  0x48   : > { %255 = vadd.xlane.f32.xlu0 %v254_v27 }
  0x56   : > { %275 = vperm.xlu2 %1074, %v270_v29  }
  0x5c   : > { %281 = vperm.xlu0 %1075, %v270_v29  }
  0x5e   : > { %1077 = vset.pattern.permute.xlu2 %v1510_v30 }
  0x60   : > { %287 = vperm.xlu1 %1076, %v270_v29  }
  0x64   : > { %1082 = vset.pattern.permute.xlu0 %v1434_v1 }
  0x66   : > { %293 = vperm.xlu2 %1077, %v270_v29  }
  0x68   : > { %1079 = vset.pattern.permute.xlu1 %v1515_v31 }
  0x6c   : > { %324 = vperm.xlu0 %1082, %v319_v32  }
  0x6e   : > { %1078 = vset.pattern.permute.xlu2 %v1519_v33 }
  0x70   : > { %305 = vperm.xlu1 %1079, %v270_v29  }
  0x74   : > { %1087 = vset.pattern.permute.xlu0 %v1515_v31 }
  0x76   : > { %299 = vperm.xlu2 %1078, %v270_v29  }
  0x78   : > { %1081 = vset.pattern.permute.xlu1 %v1524_v34 }
  0x7c   : > { %354 = vperm.xlu0 %1087, %v319_v32  }
  0x7e   : > { %1080 = vset.pattern.permute.xlu2 %v1528_v35 }
  0x80   : > { %317 = vperm.xlu1 %1081, %v270_v29  }
  0x84   : > { %1092 = vset.pattern.permute.xlu0 %v1466_v12 }
  0x86   : > { %311 = vperm.xlu2 %1080, %v270_v29  }
  0x88   : > { %1084 = vset.pattern.permute.xlu1 %v1466_v12 }
  0x8c   : > { %385 = vperm.xlu0 %1092, %v368_v36  }
  0x8e   : > { %1083 = vset.pattern.permute.xlu2 %v1438_v2 }
  0x90   : > { %336 = vperm.xlu1 %1084, %v319_v32  }
  0x94   : > { %1097 = vset.pattern.permute.xlu0 %v1524_v34 }
  0x96   : > { %330 = vperm.xlu2 %1083, %v319_v32  }
  0x98   : > { %1086 = vset.pattern.permute.xlu1 %v1519_v33 }
  0x9c   : > { %415 = vperm.xlu0 %1097, %v368_v36  }
  0x9e   : > { %1085 = vset.pattern.permute.xlu2 %v1510_v30 }
  0xa0   : > { %348 = vperm.xlu1 %1086, %v319_v32  }
  0xa4   : > { %1102 = vset.pattern.permute.xlu0 %v1519_v33 }
  0xa6   : > { %342 = vperm.xlu2 %1085, %v319_v32  }
  0xa8   : > { %1089 = vset.pattern.permute.xlu1 %v1524_v34 }
  0xa9   : > { %v1541_v38 = vpop.xlane.xlu2 %249 }
  0xaa   : > { %v244_v55 = vpop.xlane.xlu1 %243 }
  0xab   : > { %v238_v40 = vpop.xlane.xlu0 %237  ;;  %v262_v29 = vmul.f32 0.00390625, %v244_v55 }
  0xac   : > { %446 = vperm.xlu0 %1102, %v1538_v37   ;;  %v1545_v41 = vmul.f32 0.00390625, %v238_v40 }
  0xae   : > { %1088 = vset.pattern.permute.xlu2 %v1528_v35 }
  0xb0   : > { %366 = vperm.xlu1 %1089, %v319_v32  }
  0xb1   : > { %v253_v39 = vpop.xlane.xlu2 %252 }
  0xb2   : > { %v247_v56 = vpop.xlane.xlu1 %246  ;;  %v1577_v20 = vmul.f32 0.00390625, %v253_v39 }
  0xb3   : > { %v241_v43 = vpop.xlane.xlu0 %240  ;;  %v1573_v6 = vmul.f32 0.00390625, %v247_v56 }
  0xb4   : > { %1107 = vset.pattern.permute.xlu0 %v1294_v46  ;;  %v1551_v47 = vmul.f32 0.00390625, %v241_v43 }
  0xb6   : > { %360 = vperm.xlu2 %1088, %v319_v32  }
  0xb8   : > { %1091 = vset.pattern.permute.xlu1 %v1438_v2 }
  0xb9   : > { %v276_v42 = vpop.permute.xlu2 %275 }
  0xba   : > { %v498_v44 = vmul.f32 %v276_v42, %v1545_v41  ;;  %v259_v59 = vpop.xlane.xlu1 %258  ;;  %v264_v42 = vmul.f32 0.00390625, %v1541_v38 }
  0xbb   : > { %v256_v45 = vpop.xlane.xlu0 %255 }
  0xbc   : > { %v1556_v52 = vmul.f32 0.00390625, %v256_v45 }
  0xbe   : > { %1090 = vset.pattern.permute.xlu2 %v1434_v1 }
  0xc0   : > { %379 = vperm.xlu1 %1091, %v368_v36  }
  0xc1   : > { %v294_v50 = vpop.permute.xlu2 %293 }
  0xc2   : > { %v501_v10 = vmul.f32 %v294_v50, %v1573_v6 }
  0xc6   : > { %373 = vperm.xlu2 %1090, %v368_v36  }
  0xc8   : > { %1094 = vset.pattern.permute.xlu1 %v1519_v33 }
  0xce   : > { %v282_v48 = vpop.permute.xlu0 %281  ;;  %1093 = vset.pattern.permute.xlu2 %v1510_v30 }
  0xcf   : > { %v499_v49 = vmul.f32 %v282_v48, %v1551_v47  ;;  %v267_v48 = vmul.f32 0.00390625, %v259_v59 }
  0xd0   : > { %397 = vperm.xlu1 %1094, %v368_v36   ;;  %v300_v51 = vpop.permute.xlu2 %299 }
  0xd1   : > { %566 = vperm.xlu0 %1107, %v499_v49  }
  0xd2   : > { %v288_v60 = vpop.permute.xlu1 %287 }
  0xd3   : > { %v500_v32 = vmul.f32 %v288_v60, %v262_v29 }
  0xd6   : > { %391 = vperm.xlu2 %1093, %v368_v36  }
  0xd8   : > { %1096 = vset.pattern.permute.xlu1 %v1528_v35 }
  0xde   : > { %1095 = vset.pattern.permute.xlu2 %v1515_v31  ;;  %v325_v26 = vpop.permute.xlu0 %324 }
  0xe0   : > { %409 = vperm.xlu1 %1096, %v368_v36   ;;  %v312_v53 = vpop.permute.xlu2 %311 }
  0xe1   : > { %v504_v54 = vmul.f32 %v312_v53, %v1556_v52 }
  0xe2   : > { %v306_v61 = vpop.permute.xlu1 %305 }
  0xe3   : > { %581 = vperm.xlu0 %1107, %v504_v54   ;;  %v503_v21 = vmul.f32 %v306_v61, %v1577_v20 }
  0xe6   : > { %403 = vperm.xlu2 %1095, %v368_v36   ;;  %v506_v36 = vmul.f32 %v325_v26, %v1545_v41 }
  0xe8   : > { %1099 = vset.pattern.permute.xlu1 %v1438_v2 }
  0xee   : > { %1098 = vset.pattern.permute.xlu2 %v1434_v1  ;;  %v355_v43 = vpop.permute.xlu0 %354 }
  0xf0   : > { %428 = vperm.xlu1 %1099, %v1538_v37   ;;  %v331_v57 = vpop.permute.xlu2 %330 }
  0xf1   : > { %v507_v58 = vmul.f32 %v331_v57, %v1551_v47 }
  0xf2   : > { %v318_v62 = vpop.permute.xlu1 %317 }
  0xf3   : > { %590 = vperm.xlu0 %1107, %v507_v58  }
  0xf6   : > { %422 = vperm.xlu2 %1098, %v1538_v37  }
  0xf8   : > { %1101 = vset.pattern.permute.xlu1 %v1510_v30 }
  0xfe   : > { %1100 = vset.pattern.permute.xlu2 %v1466_v12  ;;  %v386_v49 = vpop.permute.xlu0 %385 }
  0xff   : > { %v516_v50 = vmul.f32 %v386_v49, %v262_v29 }
 0x100   : > { %440 = vperm.xlu1 %1101, %v1538_v37   ;;  %v343_v11 = vpop.permute.xlu2 %342 }
 0x101   : > { %v509_v56 = vmul.f32 %v343_v11, %v1573_v6 }
 0x102   : > { %v337_v63 = vpop.permute.xlu1 %336 }
 0x103   : > { %v508_v54 = vmul.f32 %v337_v63, %v262_v29 }
 0x106   : > { %434 = vperm.xlu2 %1100, %v1538_v37  }
 0x108   : > { %1104 = vset.pattern.permute.xlu1 %v1528_v35 }
 0x10e   : > { %1103 = vset.pattern.permute.xlu2 %v1515_v31 }
 0x110   : > { %458 = vperm.xlu1 %1104, %v1538_v37   ;;  %v361_v27 = vpop.permute.xlu2 %360 }
 0x111   : > { %v512_v60 = vmul.f32 %v361_v27, %v1556_v52 }
 0x112   : > { %v349_v19 = vpop.permute.xlu1 %348 }
 0x113   : > { %v510_v55 = vmul.f32 %v349_v19, %v264_v42 }
 0x116   : > { %452 = vperm.xlu2 %1103, %v1538_v37  }
 0x118   : > { %1106 = vset.pattern.permute.xlu1 %v1294_v46 }
 0x119   : > { %563 = vperm.xlu1 %1106, %v498_v44   ;;  %v502_v44 = vmul.f32 %v300_v51, %v264_v42  ;;  %v511_v51 = vmul.f32 %v355_v43, %v1577_v20 }
 0x11e   : > { %1105 = vset.pattern.permute.xlu2 %v1524_v34 }
 0x121   : > { %572 = vperm.xlu1 %1106, %v501_v10  }
 0x122   : > { %v367_v28 = vpop.permute.xlu1 %366 }
 0x123   : > { %v513_v63 = vmul.f32 %v367_v28, %v267_v48 }
 0x126   : > { %464 = vperm.xlu2 %1105, %v1538_v37   ;;  %v374_v37 = vpop.permute.xlu2 %373 }
 0x127   : > { %v514_v45 = vmul.f32 %v374_v37, %v1545_v41 }
 0x129   : > { %578 = vperm.xlu1 %1106, %v503_v21   ;;  %v416_v21 = vpop.permute.xlu0 %415 }
 0x12e   : > { %1108 = vset.pattern.permute.xlu2 %v1294_v46  ;;  %v505_v46 = vmul.f32 %v318_v62, %v267_v48 }
 0x12f   : > { %569 = vperm.xlu2 %1108, %v500_v32  }
 0x130   : > { %v392_v53 = vpop.permute.xlu2 %391 }
 0x131   : > { %587 = vperm.xlu1 %1106, %v506_v36   ;;  %v517_v61 = vmul.f32 %v392_v53, %v1573_v6 }
 0x132   : > { %v380_v40 = vpop.permute.xlu1 %379 }
 0x133   : > { %v515_v39 = vmul.f32 %v380_v40, %v1551_v47 }
 0x135   : > { %614 = vperm.xlu0 %1107, %v515_v39   ;;  %v447_v39 = vpop.permute.xlu0 %446 }
 0x136   : > { %v526_v43 = vmul.f32 %v447_v39, %v264_v42 }
 0x137   : > { %575 = vperm.xlu2 %1108, %v502_v44  }
 0x139   : > { %611 = vperm.xlu1 %1106, %v514_v45  }
 0x13f   : > { %584 = vperm.xlu2 %1108, %v505_v46  }
 0x140   : > { %v404_v38 = vpop.permute.xlu2 %403 }
 0x141   : > { %617 = vperm.xlu1 %1106, %v516_v50   ;;  %v519_v32 = vmul.f32 %v404_v38, %v1577_v20 }
 0x142   : > { %v398_v59 = vpop.permute.xlu1 %397 }
 0x143   : > { %v518_v10 = vmul.f32 %v398_v59, %v264_v42  ;;  %v567_v42 = vpop.permute.xlu0 %566 }
 0x147   : > { %593 = vperm.xlu2 %1108, %v508_v54  }
 0x149   : > { %599 = vperm.xlu1 %1106, %v510_v55  }
 0x14f   : > { %596 = vperm.xlu2 %1108, %v509_v56  }
 0x150   : > { %v423_v57 = vpop.permute.xlu2 %422 }
 0x151   : > { %v522_v58 = vmul.f32 %v423_v57, %v1545_v41  ;;  %602 = vperm.xlu1 %1106, %v511_v51   ;;  %v521_v41 = vmul.f32 %v416_v21, %v267_v48 }
 0x152   : > { %v410_v62 = vpop.permute.xlu1 %409 }
 0x153   : > { %635 = vperm.xlu0 %1107, %v522_v58   ;;  %v520_v36 = vmul.f32 %v410_v62, %v1556_v52 }
 0x159   : > { %605 = vperm.xlu1 %1106, %v512_v60  }
 0x15b   : > { %620 = vperm.xlu0 %1107, %v517_v61  }
 0x160   : > { %v435_v26 = vpop.permute.xlu2 %434 }
 0x161   : > { %608 = vperm.xlu1 %1106, %v513_v63   ;;  %v524_v27 = vmul.f32 %v435_v26, %v262_v29  ;;  %v1597_v29 = vand.u32 127, %v271_v0 }
 0x162   : > { %v429_v11 = vpop.permute.xlu1 %428 }
 0x163   : > { %v523_v19 = vmul.f32 %v429_v11, %v1551_v47  ;;  %623 = vperm.xlu0 %1107, %v518_v10   ;;  %v1600_v46 = vadd.s32 4294967280, %v1597_v29  ;;  %v1603_v50 = vadd.s32 4294967288, %v1597_v29  ;;  %v1612_v56 = vadd.s32 4294967272, %v1597_v29  ;;  %v1624_v10 = vpop.permute.xlu0 %581 }
 0x165   : > { %638 = vperm.xlu2 %1108, %v523_v19  }
 0x169   : > { %632 = vperm.xlu1 %1106, %v521_v41  }
 0x16b   : > { %626 = vperm.xlu0 %1107, %v519_v32   ;;  %v591_v19 = vpop.permute.xlu0 %590 }
 0x16d   : > { %641 = vperm.xlu2 %1108, %v524_v27  }
 0x170   : > { %v453_v47 = vpop.permute.xlu2 %452 }
 0x171   : > { %v527_v45 = vmul.f32 %v453_v47, %v1577_v20  ;;  %v662_v20 = vperm.slane %v567_v42, %v1603_v50 }
 0x172   : > { %v441_v40 = vpop.permute.xlu1 %440 }
 0x173   : > { %v525_v28 = vmul.f32 %v441_v40, %v1573_v6  ;;  %629 = vperm.xlu0 %1107, %v520_v36  }
 0x175   : > { %644 = vperm.xlu2 %1108, %v525_v28  }
 0x17d   : > { %647 = vperm.xlu2 %1108, %v526_v43  }
 0x180   : > { %v465_v37 = vpop.permute.xlu2 %464 }
 0x181   : > { %v529_v53 = vmul.f32 %v465_v37, %v267_v48  ;;  %v1615_v48 = vadd.s32 4294967264, %v1597_v29 }
 0x182   : > { %v459_v44 = vpop.permute.xlu1 %458 }
 0x183   : > { %v528_v49 = vmul.f32 %v459_v44, %v1556_v52 }
 0x185   : > { %653 = vperm.xlu0 %1107, %v528_v49   ;;  %650 = vperm.xlu2 %1108, %v527_v45   ;;  %v677_v49 = vadd.s32 4294967256, %v1597_v29 }
 0x189   : > { %v570_v6 = vpop.permute.xlu2 %569 }
 0x18a   : > { %v666_v55 = vperm.slane %v570_v6, %v1600_v46 }
 0x18b   : > { %v564_v54 = vpop.permute.xlu1 %563 }
 0x18c   : > { %v660_v52 = vperm.slane %v564_v54, %v1597_v29 }
 0x18d   : > { %656 = vperm.xlu2 %1108, %v529_v53   ;;  %1109 = vset.pattern.permute.xlu0 %v1434_v1  ;;  %v690_v53 = vperm.slane %v591_v19, %v1603_v50 }
 0x18e   : > { %v664_v0 = vsel %vm663_vm0, %v662_v20, %v660_v52 }
 0x18f   : > { %v668_v38 = vsel %vm667_vm1, %v666_v55, %v664_v0  ;;  %v681_v55 = vadd.s32 4294967248, %v1597_v29  ;;  %v685_v0 = vadd.s32 4294967240, %v1597_v29 }
 0x191   : > { %v576_v51 = vpop.permute.xlu2 %575 }
 0x192   : > { %v674_v59 = vperm.slane %v576_v51, %v1615_v48 }
 0x193   : > { %v573_v57 = vpop.permute.xlu1 %572 }
 0x194   : > { %v670_v58 = vperm.slane %v573_v57, %v1612_v56 }
 0x195   : > { %1110 = vset.pattern.permute.xlu2 %v1438_v2 }
 0x196   : > { %v672_v1 = vsel %vm671_vm2, %v670_v58, %v668_v38 }
 0x197   : > { %v676_v60 = vsel %vm675_vm3, %v674_v59, %v672_v1 }
 0x199   : > { %v1622_v62 = vpop.permute.xlu2 %584 }
 0x19b   : > { %v579_v61 = vpop.permute.xlu1 %578 }
 0x19c   : > { %v678_v54 = vperm.slane %v579_v61, %v677_v49 }
 0x1a1   : > { %v594_v11 = vpop.permute.xlu2 %593 }
 0x1a2   : > { %v692_v57 = vperm.slane %v594_v11, %v1600_v46 }
 0x1a3   : > { %v588_v63 = vpop.permute.xlu1 %587 }
 0x1a4   : > { %v689_v6 = vperm.slane %v588_v63, %v1597_v29  ;;  %v680_v63 = vsel %vm679_vm4, %v678_v54, %v676_v60 }
 0x1a6   : > { %v691_v38 = vsel %vm663_vm0, %v690_v53, %v689_v6 }
 0x1a7   : > { %v615_v26 = vpop.permute.xlu0 %614  ;;  %v693_v6 = vsel %vm667_vm1, %v692_v57, %v691_v38  ;;  %v682_v38 = vperm.slane %v1624_v10, %v681_v55 }
 0x1a8   : > { %v705_v58 = vperm.slane %v615_v26, %v1603_v50 }
 0x1a9   : > { %v597_v41 = vpop.permute.xlu2 %596 }
 0x1aa   : > { %v694_v59 = vperm.slane %v597_v41, %v1612_v56 }
 0x1ab   : > { %v612_v21 = vpop.permute.xlu1 %611 }
 0x1ac   : > { %v704_v20 = vperm.slane %v612_v21, %v1597_v29  ;;  %v695_v22 = vsel %vm671_vm2, %v694_v59, %v693_v6 }
 0x1b3   : > { %v618_v32 = vpop.permute.xlu1 %617 }
 0x1b4   : > { %v707_v51 = vperm.slane %v618_v32, %v1600_v46  ;;  %v706_v32 = vsel %vm663_vm0, %v705_v58, %v704_v20 }
 0x1b6   : > { %v708_v26 = vsel %vm667_vm1, %v707_v51, %v706_v32 }
 0x1bb   : > { %v600_v40 = vpop.permute.xlu1 %599 }
 0x1bc   : > { %v696_v11 = vperm.slane %v600_v40, %v1615_v48 }
 0x1bf   : > { %v639_v27 = vpop.permute.xlu2 %638 }
 0x1c0   : > { %v720_v41 = vperm.slane %v639_v27, %v1603_v50  ;;  %v697_v50 = vsel %vm675_vm3, %v696_v11, %v695_v22  ;;  %v686_v22 = vperm.slane %v1622_v62, %v685_v0 }
 0x1c3   : > { %v603_v39 = vpop.permute.xlu1 %602 }
 0x1c5   : > { %v636_v36 = vpop.permute.xlu0 %635 }
 0x1c6   : > { %v719_v19 = vperm.slane %v636_v36, %v1597_v29 }
 0x1c7   : > { %v642_v2 = vpop.permute.xlu2 %641 }
 0x1c8   : > { %v722_v60 = vperm.slane %v642_v2, %v1600_v46 }
 0x1cb   : > { %v606_v37 = vpop.permute.xlu1 %605 }
 0x1cc   : > { %v700_v29 = vperm.slane %v606_v37, %v681_v55 }
 0x1cd   : > { %v621_v28 = vpop.permute.xlu0 %620 }
 0x1ce   : > { %v709_v1 = vperm.slane %v621_v28, %v1612_v56  ;;  %v698_v28 = vperm.slane %v603_v39, %v677_v49 }
 0x1cf   : > { %v645_v47 = vpop.permute.xlu2 %644 }
 0x1d0   : > { %v710_v36 = vsel %vm671_vm2, %v709_v1, %v708_v26  ;;  %v724_v54 = vperm.slane %v645_v47, %v1612_v56  ;;  %v699_v46 = vsel %vm679_vm4, %v698_v28, %v697_v50  ;;  %v684_v56 = vsel %vm683_vm5, %v682_v38, %v680_v63  ;;  %v765_v50 = vld [vmem:[#allocation7] sm:$0xf] }
 0x1d1   : > { %v688_v1 = vsel %vm687_vm6, %v686_v22, %v684_v56 }
 0x1d3   : > { %v609_v42 = vpop.permute.xlu1 %608 }
 0x1d4   : > { %v702_v20 = vperm.slane %v609_v42, %v685_v0  ;;  %v701_v42 = vsel %vm683_vm5, %v700_v29, %v699_v46 }
 0x1d5   : > { %v624_v43 = vpop.permute.xlu0 %623 }
 0x1d6   : > { %v711_v21 = vperm.slane %v624_v43, %v1615_v48  ;;  %v721_v43 = vsel %vm663_vm0, %v720_v41, %v719_v19 }
 0x1d7   : > { %v648_v44 = vpop.permute.xlu2 %647  ;;  %v723_v47 = vsel %vm667_vm1, %v722_v60, %v721_v43 }
 0x1d8   : > { %v712_v40 = vsel %vm675_vm3, %v711_v21, %v710_v36  ;;  %v726_v27 = vperm.slane %v648_v44, %v1615_v48  ;;  %v725_v48 = vsel %vm671_vm2, %v724_v54, %v723_v47  ;;  %v703_v44 = vsel %vm687_vm6, %v702_v20, %v701_v42 }
 0x1dd   : > { %v627_v45 = vpop.permute.xlu0 %626 }
 0x1de   : > { %v713_v53 = vperm.slane %v627_v45, %v677_v49  ;;  %v633_v45 = vpop.permute.xlu1 %632 }
 0x1df   : > { %v651_v52 = vpop.permute.xlu2 %650  ;;  %v717_v51 = vperm.slane %v633_v45, %v685_v0 }
 0x1e0   : > { %v714_v39 = vsel %vm679_vm4, %v713_v53, %v712_v40  ;;  %v728_v2 = vperm.slane %v651_v52, %v677_v49  ;;  %v727_v49 = vsel %vm675_vm3, %v726_v27, %v725_v48 }
 0x1e2   : > { %v729_v58 = vsel %vm679_vm4, %v728_v2, %v727_v49 }
 0x1e5   : > { %v630_v61 = vpop.permute.xlu0 %629 }
 0x1e6   : > { %v715_v23 = vperm.slane %v630_v61, %v681_v55  ;;  %v735_v61 = vsel %vm734_vm7, %v703_v44, %v688_v1 }
 0x1e7   : > { %v657_v10 = vpop.permute.xlu2 %656 }
 0x1e8   : > { %v716_v37 = vsel %vm683_vm5, %v715_v23, %v714_v39  ;;  %v732_v59 = vperm.slane %v657_v10, %v685_v0 }
 0x1e9   : > { %v718_v23 = vsel %vm687_vm6, %v717_v51, %v716_v37 }
 0x1ea   : > { %v737_v19 = vsel %vm736_vm8, %v718_v23, %v735_v61 }
 0x1f7   : > { %v654_v57 = vpop.permute.xlu0 %653 }
 0x1f8   : > { %v730_v52 = vperm.slane %v654_v57, %v681_v55 }
 0x1fa   : > { %v731_v62 = vsel %vm683_vm5, %v730_v52, %v729_v58 }
 0x1fb   : > { %v733_v63 = vsel %vm687_vm6, %v732_v59, %v731_v62 }
 0x1fc   : > { %v739_v21 = vsel %vm738_vm9, %v733_v63, %v737_v19 }
 0x1fd   : > { %v742_v6 = vsel %vm741_vm10, %v739_v21, 0.0 }
 0x1fe   : > { %743 = vadd.xlane.f32.xlu1 %v742_v6 }
 0x271   : > { %v744_v55 = vpop.xlane.xlu1 %743 }
 0x272   : > { %v748_v32 = vand.u32 2147483647, %v744_v55  ;;  %v745_v54 = vmax.f32 %v744_v55, 0.0  ;;  %vm746_vm12 = vcmp.ne.f32.partialorder %v744_v55, %v744_v55 }
 0x274   : > { %v749_v11 = vsub.f32 0.0, %v748_v32 }
 0x276   : > { %v750_v53 = vmul.f32 1.442695, %v749_v11  ;;  %v1764_v11 = vld [vmem:[#allocation13_spill] sm:$0xff] }
 0x278   : > { %1118 = vpow2.f32 %v750_v53 }
 0x27e   : > { %v1119_v0 = vpop.eup %1118 }
 0x27f   : > { %v752_v26 = vadd.f32 1.0, %v1119_v0  ;;  %v755_v41 = vmul.f32 -0.5, %v1119_v0  ;;  %v758_v60 = vand.u32 2147483647, %v1119_v0 }
 0x281   : > { %1120 = vlog2.f32 %v752_v26  ;;  %v756_v28 = vadd.f32 1.0, %v755_v41  ;;  %vm759_vm11 = vcmp.lt.f32.partialorder %v758_v60, 0.0004427343 }
 0x283   : > { %v757_v43 = vmul.f32 %v1119_v0, %v756_v28 }
 0x287   : > { %v1121_v29 = vpop.eup %1120 }
 0x288   : > { %v754_v36 = vmul.f32 0.6931472, %v1121_v29 }
 0x28a   : > { %v760_v20 = vsel %vm759_vm11, %v757_v43, %v754_v36 }
 0x28b   : > { %v761_v40 = vadd.f32 %v760_v20, %v745_v54 }
 0x28d   : > { %v762_v45 = vsel %vm746_vm12, %v744_v55, %v761_v40 }
 0x28e   : > { %1122 = vtanh.f32 %v762_v45 }
 0x294   : > { %v1123_v38 = vpop.eup %1122 }
 0x295   : > { %v764_v27 = vmul.f32 %v1123_v38, %v744_v55 }
 0x297   : > { %v766_v39 = vmul.f32 %v765_v50, %v764_v27 }
 0x299   : > { %v767_v46 = vsel %vm741_vm10, %v766_v39, 0.0 }
 0x29a   : > { %v768_v2 = vrot.slane %v767_v46, 4 }
 0x29c   : > { %v769_v37 = vadd.f32 %v768_v2, %v767_v46 }
 0x29e   : > { %v770_v56 = vrot.slane %v769_v37, 2 }
 0x2a0   : > { %v771_v47 = vadd.f32 %v770_v56, %v769_v37 }
 0x2a2   : > { %v772_v42 = vrot.slane %v771_v47, 1 }
 0x2a4   : > { %v773_v51 = vadd.f32 %v772_v42, %v771_v47 }
 0x2a6   : > { %v994_v10 = vmul.f32 -1.442695, %v773_v51 }
 0x2a8   : > { %1124 = vpow2.f32 %v994_v10 }
 0x2ae   : > { %v1125_v22 = vpop.eup %1124 }
 0x2af   : > { %v777_v48 = vadd.f32 1.0, %v1125_v22 }
 0x2b1   : > { %1126 = vrcp.f32 %v777_v48  ;;  %v789_v52 = vand.u32 2147483648, %v777_v48  ;;  %v787_v58 = vand.u32 2147483647, %v777_v48  ;;  %vm783_vm14 = vweird.f32 %v777_v48 }
 0x2b3   : > { %v790_v1 = vor.u32 1.1754944e-38, %v789_v52  ;;  %vm788_vm0 = vcmp.eq.f32.partialorder %v787_v58, 8.507059e+37 }
 0x2b7   : > { %v1127_v44 = vpop.eup %1126 }
 0x2b8   : > { %v779_v57 = vmul.f32 %v1127_v44, %v777_v48  ;;  %vm784_vm13 = vweird.f32 %v1127_v44 }
 0x2b9   : > { %vm785_vm15 = vmor %vm783_vm14, %vm784_vm13 }
 0x2ba   : > { %v780_v49 = vsub.f32 1.0, %v779_v57 }
 0x2bc   : > { %v781_v23 = vmul.f32 %v1127_v44, %v780_v49 }
 0x2be   : > { %v782_v59 = vadd.f32 %v1127_v44, %v781_v23 }
 0x2c0   : > { %v786_v62 = vsel %vm785_vm15, %v1127_v44, %v782_v59 }
 0x2c1   : > { %v791_v61 = vsel %vm788_vm0, %v790_v1, %v786_v62 }
 0x2c2   : > { %803 = vperm.xlu2 %1110, %v791_v61   ;;  %797 = vperm.xlu0 %1109, %v791_v61  }
 0x2ca   : > { %1111 = vset.pattern.permute.xlu2 %v1466_v12  ;;  %1112 = vset.pattern.permute.xlu0 %v1510_v30 }
 0x2d2   : > { %809 = vperm.xlu2 %1111, %v791_v61   ;;  %815 = vperm.xlu0 %1112, %v791_v61  }
 0x2da   : > { %1113 = vset.pattern.permute.xlu2 %v1519_v33  ;;  %1115 = vset.pattern.permute.xlu0 %v1528_v35 }
 0x2e2   : > { %821 = vperm.xlu2 %1113, %v791_v61   ;;  %833 = vperm.xlu0 %1115, %v791_v61  }
 0x2ea   : > { %1114 = vset.pattern.permute.xlu2 %v1515_v31  ;;  %1117 = vset.pattern.permute.xlu0 %v1524_v34 }
 0x2f2   : > { %827 = vperm.xlu2 %1114, %v791_v61  }
 0x2fa   : > { %1116 = vset.pattern.permute.xlu2 %v1524_v34 }
 0x302   : > { %839 = vperm.xlu2 %1116, %v791_v61  }
 0x31c   : > { %v804_v12 = vpop.permute.xlu2 %803 }
 0x31d   : > { %v843_v63 = vmul.f32 %v804_v12, %v1481_v17  ;;  %v844_v30 = vmul.f32 %v804_v12, %v1484_v18 }
 0x31f   : > { %859 = vst [vmem:[%s1683_s23 + $0x10] sm:$0xff] %v843_v63 }
 0x320   : > { %860 = vst [vmem:[%s1683_s23 + $0x18] sm:$0xff] %v844_v30 }
 0x32c   : > { %v810_v31 = vpop.permute.xlu2 %809 }
 0x32d   : > { %v845_v33 = vmul.f32 %v810_v31, %v1448_v5  ;;  %v846_v17 = vmul.f32 %v810_v31, %v1453_v7 }
 0x32f   : > { %861 = vst [vmem:[%s1683_s23 + $0x20] sm:$0xff] %v845_v33 }
 0x330   : > { %862 = vst [vmem:[%s1683_s23 + $0x28] sm:$0xff] %v846_v17 }
 0x334   : > { %v798_v18 = vpop.permute.xlu0 %797 }
 0x335   : > { %v841_v34 = vmul.f32 %v798_v18, %v1456_v8  ;;  %v842_v35 = vmul.f32 %v798_v18, %v1459_v9 }
 0x337   : > { %857 = vst [vmem:[%s1683_s23] sm:$0xff] %v841_v34 }
 0x338   : > { %858 = vst [vmem:[%s1683_s23 + $0x8] sm:$0xff] %v842_v35 }
 0x33c   : > { %v822_v19 = vpop.permute.xlu2 %821 }
 0x33d   : > { %v849_v21 = vmul.f32 %v822_v19, %v1442_v3  ;;  %v850_v5 = vmul.f32 %v822_v19, %v1445_v4 }
 0x33f   : > { %865 = vst [vmem:[%s1683_s23 + $0x40] sm:$0xff] %v849_v21 }
 0x340   : > { %866 = vst [vmem:[%s1683_s23 + $0x48] sm:$0xff] %v850_v5 }
 0x344   : > { %v816_v7 = vpop.permute.xlu0 %815 }
 0x345   : > { %v847_v6 = vmul.f32 %v816_v7, %v1475_v15  ;;  %v848_v8 = vmul.f32 %v816_v7, %v1478_v16 }
 0x347   : > { %863 = vst [vmem:[%s1683_s23 + $0x30] sm:$0xff] %v847_v6 }
 0x348   : > { %864 = vst [vmem:[%s1683_s23 + $0x38] sm:$0xff] %v848_v8 }
 0x34c   : > { %v828_v9 = vpop.permute.xlu2 %827 }
 0x34d   : > { %v851_v55 = vmul.f32 %v828_v9, %v1469_v13  ;;  %v852_v32 = vmul.f32 %v828_v9, %v1472_v14  ;;  %v1763_v14 = vld [vmem:[#allocation12_spill] sm:$0xff] }
 0x34f   : > { %867 = vst [vmem:[%s1683_s23 + $0x50] sm:$0xff] %v851_v55 }
 0x350   : > { %868 = vst [vmem:[%s1683_s23 + $0x58] sm:$0xff] %v852_v32 }
 0x354   : > { %v834_v3 = vpop.permute.xlu0 %833 }
 0x355   : > { %v853_v4 = vmul.f32 %v834_v3, %v1500_v24  ;;  %v854_v15 = vmul.f32 %v834_v3, %v1503_v25 }
 0x357   : > { %869 = vst [vmem:[%s1683_s23 + $0x60] sm:$0xff] %v853_v4 }
 0x358   : > { %870 = vst [vmem:[%s1683_s23 + $0x68] sm:$0xff] %v854_v15 }
 0x35c   : > { %v840_v13 = vpop.permute.xlu2 %839 }
 0x35d   : > { %v855_v16 = vmul.f32 %v840_v13, %v1763_v14  ;;  %v856_v53 = vmul.f32 %v840_v13, %v1764_v11 }
 0x35f   : > { %871 = vst [vmem:[%s1683_s23 + $0x70] sm:$0xff] %v855_v16 }
 0x360   : > { %872 = vst [vmem:[%s1683_s23 + $0x78] sm:$0xff] %v856_v53 }
 0x361   : > { %1245 = shalt.err (!%p1242_p8)
}
 0x362   : > { %s1295_s27 = smov 256   ;;  %s1296_s28 = smov 16  }
 0x363   : > { %1012 = dma.vmem_to_hbm [thread:$0]  (%p1369_p11), %s887_s22, 2048, %s889_s6, %s874_s16, %s1295_s27, %s1295_s27, %s1296_s28  }
 0x364 PF: > { %s903_s30 = sand.u32 1, %s1276_s12   ;;  %p1765_p9 = scmp.ge.s32.totalorder %s1288_s15, 2 }
 0x365   : > { %s904_s4 = scalar_lea.sflag [#allocation4], %s903_s30 }
 0x366   : > { %p1026_p10 = pnand %p1765_p9, %p1373_p12 }
 0x368   : > { %p1027_p1 = pneg %p1026_p10 }
 0x36a   : > { %1271 = dma.done.wait (%p1027_p1), %s904_s4, 2048  }
 0x36b   : > { %1273 = vsyncadd (%p1027_p1), %s904_s4, 4294965248  ;;  %p17_p2 = scmp.ge.s32.totalorder %s1342_s18, 4   ;;  %s1766_s12 = smov %s1280_s13 }
 0x36c   : > { %s1767_s13 = smov %s1284_s14  ;;  %s1768_s14 = smov %s1354_s21 }
 0x36d   : > { %s1769_s15 = smov %s1342_s18  ;;  %19 = sbr.rel (!%p17_p2) target bundleno = 6 (0x6), region = 85 }
 0x372   :  { %910 = vsyncpa [#allocation3], 1 }
 0x373   :  { %912 = vsyncpa [#allocation3 + $0x1], 1 }
 0x374   :  { %913 = vsyncpa [#allocation6], 1 }
 0x375   :  { %914 = vsyncpa [#allocation4], 1 }
 0x376   :  { %916 = vsyncpa [#allocation4 + $0x1], 1 }

</bundles_post_ra>
